<compile_context>
chip_gen: v7x
topology: tpu7x:2x2x1
jax: 0.10.0
libtpu: 0.0.40
codegen_flags: <defaults>
</compile_context>

<pallas_src>
import functools

import jax
import jax.numpy as jnp
from jax.experimental import pallas as pl
from jax.experimental.pallas import tpu as pltpu


# ----------------------------------------------------------------------------
# Parameter setup (matches torch __init__, deterministic; handles odd d_model)
# ----------------------------------------------------------------------------
def make_pe_table(d_model: int, max_len: int = 5000) -> jnp.ndarray:
    """Returns pe of shape (max_len, d_model), float32."""
    position = jnp.arange(0, max_len, dtype=jnp.float32)[:, None]            # (L, 1)
    div_term = jnp.exp(
        jnp.arange(0, d_model, 2, dtype=jnp.float32)
        * (-jnp.log(jnp.float32(10000.0)) / d_model)
    )                                                                         # (ceil(D/2),)
    pe = jnp.zeros((max_len, d_model), dtype=jnp.float32)
    pe = pe.at[:, 0::2].set(jnp.sin(position * div_term))
    pe = pe.at[:, 1::2].set(jnp.cos(position * div_term[: d_model // 2]))
    return pe


# ----------------------------------------------------------------------------
# Portable integer hash (lowbias32) - used for the dropout mask.
# ----------------------------------------------------------------------------
def _mix32(v):
    """uint32 -> uint32 avalanche hash; pure VPU int ops (works in interpret mode)."""
    v = v ^ (v >> 16)
    v = v * jnp.uint32(0x7FEB352D)
    v = v ^ (v >> 15)
    v = v * jnp.uint32(0x846CA68B)
    v = v ^ (v >> 16)
    return v


def _mix32_py(v: int) -> int:
    """Python-side copy of _mix32 (pre-mix the seed once in the wrapper)."""
    v &= 0xFFFFFFFF
    v ^= v >> 16
    v = (v * 0x7FEB352D) & 0xFFFFFFFF
    v ^= v >> 15
    v = (v * 0x846CA68B) & 0xFFFFFFFF
    v ^= v >> 16
    return v


# ----------------------------------------------------------------------------
# Pallas kernels (operate on x flattened to (S, B*D); pe block is (tS, D) f32)
# ----------------------------------------------------------------------------
def _pe_add_kernel(x_ref, pe_ref, o_ref, *, batch):
    # Broadcast pe over the batch axis inside the kernel (no extra HBM traffic).
    pe_b = jnp.tile(pe_ref[...], (1, batch))                    # (tS, B*D), f32
    val = x_ref[...].astype(jnp.float32) + pe_b                 # f32 math (v5e friendly)
    o_ref[...] = val.astype(o_ref.dtype)


def _pe_add_dropout_kernel(seed_ref, x_ref, pe_ref, o_ref, *, batch, p, tile_s):
    pe_b = jnp.tile(pe_ref[...], (1, batch))
    val = x_ref[...].astype(jnp.float32) + pe_b

    tS, N = val.shape
    # Global element index -> mask is identical regardless of tiling / grid size.
    rows = jax.lax.broadcasted_iota(jnp.int32, (tS, N), 0) + pl.program_id(0) * tile_s
    cols = jax.lax.broadcasted_iota(jnp.int32, (tS, N), 1)
    gidx = (rows * N + cols).astype(jnp.uint32)
    # Seed was pre-mixed in the wrapper; broadcast it in the vector domain.
    seed_b = jnp.full((tS, N), seed_ref[0], dtype=jnp.int32).astype(jnp.uint32)
    bits = _mix32(gidx ^ seed_b)

    # Drop iff bits < p * 2^32 (uint threshold compare: no convert / fp-mul chain).
    thr = jnp.uint32(min(int(round(p * (2 ** 32))), 2 ** 32 - 1))
    keep = bits >= thr
    scale = jnp.float32(1.0 / (1.0 - p))
    o_ref[...] = jnp.where(keep, val * scale, jnp.float32(0.0)).astype(o_ref.dtype)


# ----------------------------------------------------------------------------
# Tile selection / VMEM budgeting
# ----------------------------------------------------------------------------
def _round_down(v, m):
    return (v // m) * m


def _vmem_capacity_bytes() -> int:
    try:
        info = pltpu.get_tpu_info()
        cap = getattr(info, "vmem_capacity_bytes", None)
        if cap:
            return int(cap)
    except Exception:
        pass
    return 64 * 1024 * 1024  # conservative fallback (v7x per-TC VMEM)


def _choose_tile_s(S, n_cols, x_itemsize, target_bytes, min_steps=4):
    """Pick an S-tile so one *padded* x block is ~<= target_bytes, keeping at least
    min_steps grid steps when S allows (pipeline overlap + v7x 2-TC sharding)."""
    sub = 8 * max(1, 4 // x_itemsize)              # sublane multiple: 8 f32, 16 bf16, 32 int8
    lane_cols = -(-n_cols // 128) * 128            # lane padding inside VMEM
    row_bytes = max(1, lane_cols * x_itemsize)
    tS = max(1, target_bytes // row_bytes)
    if S >= min_steps * sub:
        tS = min(tS, -(-S // min_steps))           # keep the grid (and both TCs) busy
    if tS >= S:
        return S                                   # full extent is always a legal block dim
    return min(S, max(sub, _round_down(tS, sub)))


# ----------------------------------------------------------------------------
# Wrapper
# ----------------------------------------------------------------------------
def positional_encoding(x, pe, *, dropout_p: float = 0.1, training: bool = False,
                        seed: int = 0, donate_x: bool = False):
    """x: (S, B, D); pe: (max_len, D) float32 table.

    donate_x: only set True if the caller actually donates x under jit;
    otherwise XLA would insert a defensive copy and the alias buys nothing.
    """
    S, B, D = x.shape
    N = B * D
    itemsize = jnp.dtype(x.dtype).itemsize

    # Lane-dense view of x: last dim = B*D (contiguous reshape, effectively free).
    x2 = x.reshape(S, N)
    pe_slice = pe[:S]                                           # (S, D), f32 (add in f32)

    cap = _vmem_capacity_bytes()
    target = min(8 << 20, cap // 16)                            # ~8 MiB v5e/v6e, ~4 MiB v7x
    tS = _choose_tile_s(S, N, itemsize, target)
    grid = (pl.cdiv(S, tS),)

    x_spec = pl.BlockSpec((tS, N), lambda i: (i, 0))            # full-extent lane axis
    pe_spec = pl.BlockSpec((tS, D), lambda i: (i, 0))
    out_shape = jax.ShapeDtypeStruct((S, N), x.dtype)

    # VMEM budget: double-buffered x + out + pe, with lane/sublane padding.
    sub_x = 8 * max(1, 4 // itemsize)
    tS_pad_x = -(-tS // sub_x) * sub_x
    tS_pad_pe = -(-tS // 8) * 8
    lane_n = -(-N // 128) * 128
    lane_d = -(-D // 128) * 128
    x_blk = tS_pad_x * lane_n * itemsize
    pe_blk = tS_pad_pe * lane_d * 4
    needed = 2 * (2 * x_blk + pe_blk)                           # 2x in + 2x out + 2x pe
    vmem_limit = int(min(cap // 2, max(needed * 3 // 2, 24 << 20)))

    cparams = pltpu.CompilerParams(
        dimension_semantics=("parallel",),
        vmem_limit_bytes=vmem_limit,
    )
    bytes_accessed = 2 * S * N * itemsize + S * D * 4

    if (not training) or dropout_p == 0.0:
        # eval mode: dropout is identity
        kernel = functools.partial(_pe_add_kernel, batch=B)
        out2 = pl.pallas_call(
            kernel,
            out_shape=out_shape,
            grid=grid,
            in_specs=[x_spec, pe_spec],
            out_specs=x_spec,
            input_output_aliases=({0: 0} if donate_x else {}),
            compiler_params=cparams,
            cost_estimate=pl.CostEstimate(
                flops=S * N, transcendentals=0, bytes_accessed=bytes_accessed),
        )(x2, pe_slice)
        return out2.reshape(S, B, D)

    # Training mode: inverted dropout. Seed is pre-mixed host-side, passed via SMEM.
    seed_mixed = _mix32_py(int(seed))
    if seed_mixed >= (1 << 31):
        seed_mixed -= (1 << 32)                                 # reinterpret as int32
    seed_arr = jnp.asarray([seed_mixed], dtype=jnp.int32)

    kernel = functools.partial(_pe_add_dropout_kernel, batch=B,
                               p=float(dropout_p), tile_s=tS)
    out2 = pl.pallas_call(
        kernel,
        out_shape=out_shape,
        grid=grid,
        in_specs=[
            pl.BlockSpec(memory_space=pltpu.MemorySpace.SMEM),
            x_spec,
            pe_spec,
        ],
        out_specs=x_spec,
        input_output_aliases=({1: 0} if donate_x else {}),
        compiler_params=cparams,
        cost_estimate=pl.CostEstimate(
            flops=16 * S * N, transcendentals=0, bytes_accessed=bytes_accessed),
    )(seed_arr, x2, pe_slice)
    return out2.reshape(S, B, D)


# ----------------------------------------------------------------------------
# Demo / correctness check
# ----------------------------------------------------------------------------
if __name__ == "__main__":
    S, B, D = 8, 2, 32  # seq=8, batch=2, d_model=32
    key = jax.random.PRNGKey(0)
    x = jax.random.normal(key, (S, B, D), dtype=jnp.float32)

    pe = make_pe_table(d_model=D, max_len=5000)
    ref = x + pe[:S][:, None, :]

    # Eval-mode forward (dropout is identity in eval, as in nn.Dropout.eval()).
    out = positional_encoding(x, pe, dropout_p=0.1, training=False)
    out = jax.block_until_ready(out)
    assert out.shape == (S, B, D)
    assert out.dtype == x.dtype
    assert jnp.allclose(out, ref, atol=1e-6, rtol=1e-6)

    # Training-mode forward: every element is either 0 (dropped) or ref/(1-p).
    p = 0.1
    out_tr = positional_encoding(x, pe, dropout_p=p, training=True, seed=123)
    out_tr = jax.block_until_ready(out_tr)
    assert out_tr.shape == (S, B, D)
    assert out_tr.dtype == x.dtype
    kept_ok = jnp.isclose(out_tr, ref / (1.0 - p), atol=1e-5, rtol=1e-5)
    drop_ok = jnp.isclose(out_tr, 0.0, atol=1e-6)
    assert bool(jnp.all(jnp.logical_or(kept_ok, drop_ok)))
    assert not bool(jnp.all(kept_ok))   # at least one element dropped
    assert not bool(jnp.all(drop_ok))   # at least one element kept

    # TODO(synk): training-mode dropout uses a deterministic in-kernel counter hash,
    # so the exact mask differs from torch's RNG stream (inverted-dropout semantics match).

    print("KERNEL_OK")
</pallas_src>

<mosaic_0001>
module attributes {stable_mosaic.version = 11 : i64} {
  func.func @_pe_add_kernel(%arg0: i32, %arg1: memref<8x64xf32, #tpu.memory_space<vmem>>, %arg2: memref<8x32xf32, #tpu.memory_space<vmem>>, %arg3: memref<8x64xf32, #tpu.memory_space<vmem>>) attributes {dimension_semantics = [#tpu.dimension_semantics<parallel>], iteration_bounds = array<i64: 1>, scalar_prefetch = 0 : i64, scratch_operands = 0 : i64, tpu.core_type = #tpu.core_type<tc>, window_params = [{transform_indices = @transform_0, window_bounds = array<i64: 8, 64>}, {transform_indices = @transform_1, window_bounds = array<i64: 8, 32>}, {transform_indices = @transform_2, window_bounds = array<i64: 8, 64>}]} {
    %c0 = arith.constant 0 : index
    %c0_0 = arith.constant 0 : index
    %0 = vector.load %arg2[%c0, %c0_0] : memref<8x32xf32, #tpu.memory_space<vmem>>, vector<8x32xf32>
    %1 = tpu.concatenate %0, %0 in 1 : vector<8x32xf32>, vector<8x32xf32> -> vector<8x64xf32>
    %c0_1 = arith.constant 0 : index
    %c0_2 = arith.constant 0 : index
    %2 = vector.load %arg1[%c0_1, %c0_2] : memref<8x64xf32, #tpu.memory_space<vmem>>, vector<8x64xf32>
    %3 = arith.addf %2, %1 : vector<8x64xf32>
    %c0_3 = arith.constant 0 : index
    %c0_4 = arith.constant 0 : index
    %4 = vector.load %arg3[%c0_3, %c0_4] : memref<8x64xf32, #tpu.memory_space<vmem>>, vector<8x64xf32>
    tpu.vector_store %arg3[%c0_3, %c0_4], %3 {strides = array<i32>} : memref<8x64xf32, #tpu.memory_space<vmem>>, vector<8x64xf32>,
    return
  }
  func.func @transform_0(%arg0: i32) -> (i32, i32) {
    %c0_i32 = arith.constant 0 : i32
    %c0_i32_0 = arith.constant 0 : i32
    return %arg0, %c0_i32 : i32, i32
  }
  func.func @transform_1(%arg0: i32) -> (i32, i32) {
    %c0_i32 = arith.constant 0 : i32
    %c0_i32_0 = arith.constant 0 : i32
    return %arg0, %c0_i32 : i32, i32
  }
  func.func @transform_2(%arg0: i32) -> (i32, i32) {
    %c0_i32 = arith.constant 0 : i32
    %c0_i32_0 = arith.constant 0 : i32
    return %arg0, %c0_i32 : i32, i32
  }
}

</mosaic_0001>

<bundles_post_ra>
// kernel: tpu_custom_call.1
= control target key start
LH: loop header
LB: loop body
LE: loop exit
PB: predicated region body
PF: predicated region fallthrough
CT: control target
= control target key end

     0   :  { %7 = vsyncpa [#allocation3], 0  ;;  %s194_s0 = inlined_call_operand.hbm [shape: f32[8,64], index: 0, kind: input, shape index: {}]   ;;  %s195_s1 = inlined_call_operand.hbm [shape: f32[8,32], index: 1, kind: input, shape index: {}]   ;;  %s196_s2 = inlined_call_operand.hbm [shape: f32[8,64], index: 2, kind: output, shape index: {}]  }
   0x1   :  { %8 = vsyncpa [#allocation6], 0 }
   0x2   :  { %9 = vsyncpa [#allocation4], 0  ;;  %s139_s9 = smov [#allocation2]   ;;  %s140_s11 = smov [#allocation5]  }
   0x3   :  { %s16_s10 = sshll.u32 %s139_s9, 4  ;;  %s26_s12 = sshll.u32 %s140_s11, 4  ;;  %s17_s10 = int_to_ptr.vmem [resolvable:$true] %s16_s10  ;;  %s27_s12 = int_to_ptr.vmem [resolvable:$true] %s26_s12 }
   0x4   :  { %s67_s15 = scalar_lea.hbm %s194_s0, 128 }
   0x5   :  { %p68_p0 = scmp.ne.s32.totalorder %s194_s0, %s67_s15  ;;  %p71_p1 = scmp.lt.u32.totalorder %s67_s15, %s194_s0 }
   0x7   :  { %p73_p2 = pnand %p71_p1, %p68_p0 }
   0x9   :  { %76 = shalt.err (!%p73_p2)
}
   0xa   :  { %s77_s20 = scalar_lea.vmem %s17_s10, 128  ;;  %p82_p4 = scmp.lt.s32.totalorder %s17_s10, %s17_s10 }
   0xb   :  { %p78_p3 = scmp.ne.s32.totalorder %s17_s10, %s77_s20  ;;  %p83_p5 = scmp.lt.s32.totalorder %s77_s20, %s77_s20 }
   0xd   :  { %p84_p6 = por %p83_p5, %p82_p4 }
   0xf   :  { %p85_p7 = pnand %p84_p6, %p78_p3 }
  0x11   :  { %88 = shalt.err (!%p85_p7)
}
  0x12   :  { %19 = dma.hbm_to_vmem [thread:$0]  %s194_s0, 128, %s17_s10, [#allocation3]  }
  0x13   :  { %s89_s25 = scalar_lea.hbm %s195_s1, 128 }
  0x14   :  { %p90_p8 = scmp.ne.s32.totalorder %s195_s1, %s89_s25  ;;  %p93_p9 = scmp.lt.u32.totalorder %s89_s25, %s195_s1 }
  0x16   :  { %p95_p10 = pnand %p93_p9, %p90_p8 }
  0x18   :  { %98 = shalt.err (!%p95_p10)
}
  0x19   :  { %s99_s30 = scalar_lea.vmem %s27_s12, 128  ;;  %p104_p12 = scmp.lt.s32.totalorder %s27_s12, %s27_s12 }
  0x1a   :  { %p100_p11 = scmp.ne.s32.totalorder %s27_s12, %s99_s30  ;;  %p105_p13 = scmp.lt.s32.totalorder %s99_s30, %s99_s30 }
  0x1c   :  { %p106_p0 = por %p105_p13, %p104_p12 }
  0x1e   :  { %p107_p1 = pnand %p106_p0, %p100_p11 }
  0x20   :  { %110 = shalt.err (!%p107_p1)
}
  0x21   :  { %29 = dma.hbm_to_vmem [thread:$0]  %s195_s1, 128, %s27_s12, [#allocation6]  }
  0x22   :  { %133 = dma.done.wait [#allocation3], 128  }
  0x23   :  { %134 = vsyncadd [#allocation3], 4294967168 }
  0x24   :  { %135 = dma.done.wait [#allocation6], 128  }
  0x25   :  { %136 = vsyncadd [#allocation6], 4294967168  ;;  %v36_v0 = vld [vmem:[#allocation5] sm:$0xff]  ;;  %s141_s4 = smov 32   ;;  %vm41_vm0 = vcmask 261120   ;;  %v43_v1 = vld [vmem:[#allocation2] sm:$0xff] }
  0x26   :  { %38 = vrot.lane.b32.xlu0 %v36_v0, %s141_s4  ;;  %s142_s5 = smov [#allocation7]   ;;  %vm45_vm1 = vcmask 523264  }
  0x27   :  { %s53_s6 = sshll.u32 %s142_s5, 4  ;;  %s54_s6 = int_to_ptr.vmem [resolvable:$true] %s53_s6 }
  0x28   :  { %s111_s7 = scalar_lea.vmem %s54_s6, 128  ;;  %p116_p3 = scmp.lt.s32.totalorder %s54_s6, %s54_s6 }
  0x29   :  { %p112_p2 = scmp.ne.s32.totalorder %s54_s6, %s111_s7  ;;  %p117_p4 = scmp.lt.s32.totalorder %s111_s7, %s111_s7 }
  0x2b   :  { %p118_p5 = por %p117_p4, %p116_p3 }
  0x2d   :  { %p119_p6 = pnand %p118_p5, %p112_p2 }
  0x98   :  { %v39_v2 = vpop.permute.xlu0 %38 }
  0x99   :  { %v42_v3 = vsel %vm41_vm0, %v36_v0, %v39_v2 }
  0x9a   :  { %v44_v4 = vadd.f32 %v43_v1, %v42_v3 }
  0x9c   :  { %46 = vst.msk [vmem:[#allocation7] sm:$0xff] %vm45_vm1, %v44_v4 }
  0x9d   :  { %122 = shalt.err (!%p119_p6)
}
  0x9e   :  { %s123_s9 = scalar_lea.hbm %s196_s2, 128 }
  0x9f   :  { %p124_p7 = scmp.ne.s32.totalorder %s196_s2, %s123_s9  ;;  %p127_p8 = scmp.lt.u32.totalorder %s123_s9, %s196_s2 }
  0xa1   :  { %p129_p9 = pnand %p127_p8, %p124_p7 }
  0xa3   :  { %132 = shalt.err (!%p129_p9)
}
  0xa4   :  { %56 = dma.vmem_to_hbm [thread:$0]  %s54_s6, 128, %s196_s2, [#allocation4]  }
  0xa5   :  { %137 = dma.done.wait [#allocation4], 128  }
  0xa6   :  { %138 = vsyncadd [#allocation4], 4294967168 }
  0xa7   :  { %60 = vsyncpa [#allocation3], 1 }
  0xa8   :  { %61 = vsyncpa [#allocation6], 1 }
  0xa9   :  { %62 = vsyncpa [#allocation4], 1 }

</bundles_post_ra>
